<compile_context>
chip_gen: v7x
topology: tpu7x:2x2x1
jax: 0.10.0
libtpu: 0.0.40
codegen_flags: <defaults>
</compile_context>

<pallas_src>
import functools

import numpy as np
import jax
import jax.numpy as jnp
from jax.experimental import pallas as pl
from jax.experimental.pallas import tpu as pltpu


# ----------------------------------------------------------------------------
# Fused Pallas kernel:  out[p] = act( X[p] @ W[p] + shift )
# (K untiled -> single dot per grid step, no accumulator scratch)
# ----------------------------------------------------------------------------
def _matmul_shift_act_kernel(x_ref, w_ref, shift_ref, o_ref, *, act, slope):
    z = jnp.dot(x_ref[0], w_ref[0], preferred_element_type=jnp.float32)
    z = z + shift_ref[...]
    if act == "leaky_relu":
        z = jnp.where(z >= 0, z, z * slope)
    elif act == "relu":
        z = jnp.maximum(z, 0.0)
    o_ref[0] = z.astype(o_ref.dtype)


def _round_up(x, m):
    return (x + m - 1) // m * m


_MAX_TM = 640  # 640 x 8192 bf16 X tile = 10 MiB; x2 buffers + resident W fits 48 MiB


def _pick_tm(m):
    """M tile: minimal padding, <= _MAX_TM rows, >= 2 blocks when M is large."""
    m8 = _round_up(m, 8)
    if m8 <= _MAX_TM:
        return m8
    nblk = pl.cdiv(m8, _MAX_TM)
    return _round_up(pl.cdiv(m8, nblk), 8)


@functools.lru_cache(maxsize=None)
def _vmem_limit_bytes():
    # v5e/v6e: 128 MiB physical VMEM -> 64 MiB scoped limit.
    # v7x:      64 MiB physical      -> 48 MiB (headroom for Mosaic scratch).
    try:
        cap = int(pltpu.get_tpu_info().vmem_capacity_bytes)
    except Exception:
        cap = 64 * 1024 * 1024
    return min(64 * 1024 * 1024, max(32 * 1024 * 1024, cap - 16 * 1024 * 1024))


def fused_batched_matmul_act(x, w, shift, act, slope=0.01):
    """y[p] = act(x[p] @ w[p] + shift).

    x: (P, M, K) bf16, w: (P, K, N) bf16, shift: (N,) f32 -> (P, M, N) bf16.
    K is kept whole (TK = K) so the weight tile stays resident across the
    innermost M grid axis and is loaded once per (p, N-block).
    """
    P, M, K = x.shape
    Pw, Kw, N = w.shape
    assert Pw == P and Kw == K and shift.shape == (N,)

    TM = _pick_tm(M)
    Kp = _round_up(K, 128)
    TN = min(512, _round_up(N, 128))
    Mp, Np = _round_up(M, TM), _round_up(N, TN)

    xp = x if (Mp, Kp) == (M, K) else jnp.pad(
        x, ((0, 0), (0, Mp - M), (0, Kp - K)))
    wp = w if (Kp, Np) == (K, N) else jnp.pad(
        w, ((0, 0), (0, Kp - K), (0, Np - N)))
    sh = jnp.pad(shift.astype(jnp.float32).reshape(1, N),
                 ((0, 0), (0, Np - N)))

    out = pl.pallas_call(
        functools.partial(_matmul_shift_act_kernel, act=act, slope=slope),
        out_shape=jax.ShapeDtypeStruct((P, Mp, Np), jnp.bfloat16),
        grid_spec=pltpu.PrefetchScalarGridSpec(
            num_scalar_prefetch=0,
            # M innermost so the W block index (p, 0, j) is unchanged across
            # consecutive steps -> Pallas keeps the weight tile resident.
            grid=(P, Np // TN, Mp // TM),
            in_specs=[
                pl.BlockSpec((1, TM, Kp), lambda p, j, i: (p, i, 0)),
                pl.BlockSpec((1, Kp, TN), lambda p, j, i: (p, 0, j)),
                pl.BlockSpec((1, TN), lambda p, j, i: (0, j)),
            ],
            out_specs=pl.BlockSpec((1, TM, TN), lambda p, j, i: (p, i, j)),
        ),
        compiler_params=pltpu.CompilerParams(
            dimension_semantics=("parallel", "parallel", "parallel"),
            vmem_limit_bytes=_vmem_limit_bytes()),
    )(xp, wp, sh)
    if (Mp, Np) != (M, N):
        out = out[:, :M, :N]
    return out


def fused_matmul_act(x, w, shift, act, slope=0.01):
    return fused_batched_matmul_act(x[None], w[None], shift, act, slope)[0]


# ----------------------------------------------------------------------------
# Encoder block:  Conv2d(k=4, s=2, p=33) + LeakyReLU(0.01)   (norm=False)
# Only the interior (receptive field touching real data) is computed; the
# border equals leaky_relu(bias) exactly and is filled on the XLA side.
# ----------------------------------------------------------------------------
@jax.jit
def encoder_conv(x_nhwc, w_oihw, bias):
    cout, cin, kh, kw = w_oihw.shape
    stride, padding, slope = 2, 33, 0.01
    n, h, w, _ = x_nhwc.shape
    ho = (h + 2 * padding - kh) // stride + 1
    wo = (w + 2 * padding - kw) // stride + 1

    # interior output rows/cols whose 4x4 receptive field touches real data
    oy_lo = max(0, -(-(padding - (kh - 1)) // stride))
    ox_lo = max(0, -(-(padding - (kw - 1)) // stride))
    oy_hi = min(ho - 1, (padding + h - 1) // stride)
    ox_hi = min(wo - 1, (padding + w - 1) // stride)
    ih, iw = oy_hi - oy_lo + 1, ox_hi - ox_lo + 1
    assert ih > 0 and iw > 0

    pad_t = padding - stride * oy_lo
    pad_l = padding - stride * ox_lo
    pad_b = max(0, stride * oy_hi + (kh - 1) - padding - (h - 1))
    pad_r = max(0, stride * ox_hi + (kw - 1) - padding - (w - 1))

    xb = x_nhwc.astype(jnp.bfloat16)
    xs = jnp.pad(xb, ((0, 0), (pad_t, pad_b), (pad_l, pad_r), (0, 0)))

    taps = []
    for ky in range(kh):
        for kx in range(kw):
            taps.append(xs[:, ky:ky + stride * (ih - 1) + 1:stride,
                           kx:kx + stride * (iw - 1) + 1:stride, :])
    cols = jnp.stack(taps, axis=3).reshape(n * ih * iw, kh * kw * cin)
    w_mat = jnp.transpose(w_oihw, (2, 3, 1, 0)).reshape(kh * kw * cin, cout)

    y_int = fused_matmul_act(cols, w_mat.astype(jnp.bfloat16), bias,
                             act="leaky_relu", slope=slope)
    y_int = y_int.reshape(n, ih, iw, cout)

    border = jnp.where(bias >= 0, bias, slope * bias).astype(jnp.bfloat16)
    out = jnp.broadcast_to(border, (n, ho, wo, cout))
    out = out.at[:, oy_lo:oy_hi + 1, ox_lo:ox_hi + 1, :].set(y_int)
    return out


# ----------------------------------------------------------------------------
# Decoder block: ConvTranspose2d(k=4, s=2, p=33) + BatchNorm(eval) + ReLU
# (sub-pixel decomposition: output parity (py,px) only uses taps ky=3-2a-py,
#  kx=3-2b-px on a 2x2 input neighbourhood -> K_eff = 4*C_in per phase)
# ----------------------------------------------------------------------------
@jax.jit
def decoder_deconv(x_nhwc, w_iohw, bias, gamma, beta, mean, var):
    cin, cout, kh, kw = w_iohw.shape
    assert (kh, kw) == (4, 4)
    stride, padding, eps = 2, 33, 1e-5
    n, h, w, _ = x_nhwc.shape
    ho = (h - 1) * stride - 2 * padding + kh
    wo = (w - 1) * stride - 2 * padding + kw
    assert ho > 0 and ho % 2 == 0 and wo > 0 and wo % 2 == 0
    mh, mw = ho // 2, wo // 2
    r0 = (padding - (kh - 1)) // 2            # first contributing input row/col

    scale = gamma * jax.lax.rsqrt(var + eps)  # fold eval-BN scale into weights
    shift = (bias - mean) * scale + beta
    xb = x_nhwc.astype(jnp.bfloat16)

    cols_all, w_all = [], []
    for py in (0, 1):
        for px in (0, 1):
            taps = []
            for a in (0, 1):
                for b in (0, 1):
                    taps.append(xb[:, r0 + py + a: r0 + py + a + mh,
                                   r0 + px + b: r0 + px + b + mw, :])
            cols_all.append(
                jnp.stack(taps, axis=3).reshape(n * mh * mw, 4 * cin))
            # active original-kernel taps for this phase (a,b in {0,1}):
            #   ky = 3 - 2a - py,  kx = 3 - 2b - px
            w_sel = w_iohw[:, :, 3 - py::-2, :][:, :, :, 3 - px::-2]  # (ci,co,2,2)
            w_mat = jnp.transpose(w_sel, (2, 3, 0, 1)).reshape(4 * cin, cout)
            w_all.append((w_mat * scale[None, :]).astype(jnp.bfloat16))

    y = fused_batched_matmul_act(jnp.stack(cols_all, 0), jnp.stack(w_all, 0),
                                 shift, act="relu")       # (4, n*mh*mw, cout)
    y = y.reshape(2, 2, n, mh, mw, cout)                  # (py, px, n, mh, mw, co)
    y = jnp.transpose(y, (2, 3, 0, 4, 1, 5))              # (n, mh, py, mw, px, co)
    return y.reshape(n, ho, wo, cout)


# ----------------------------------------------------------------------------
# Parameters (deterministic synthetic init) and forward pass (eval mode)
# ----------------------------------------------------------------------------
ENC_SPECS = {
    "s2b": [(4, 64), (64, 128), (128, 256), (256, 512), (512, 512), (512, 512)],
    "s2a": [(4, 64), (64, 128), (128, 256), (256, 512), (512, 512), (512, 512)],
    "s1":  [(2, 64), (64, 128), (128, 256), (256, 512), (512, 512), (512, 512)],
}
DEC_SPECS = [(1536, 512), (2048, 512), (2048, 256), (1024, 128), (512, 64),
             (256, 4)]


def init_params(seed=0):
    rng = np.random.default_rng(seed)

    def conv_p(cin, cout, ks=4):
        bound = 1.0 / np.sqrt(cin * ks * ks)
        return {"w": jnp.asarray(rng.uniform(-bound, bound,
                                             (cout, cin, ks, ks)).astype(np.float32)),
                "b": jnp.asarray(rng.uniform(-bound, bound,
                                             (cout,)).astype(np.float32))}

    def deconv_p(cin, cout, ks=4):
        bound = 1.0 / np.sqrt(cout * ks * ks)
        return {"w": jnp.asarray(rng.uniform(-bound, bound,
                                             (cin, cout, ks, ks)).astype(np.float32)),
                "b": jnp.asarray(rng.uniform(-bound, bound,
                                             (cout,)).astype(np.float32)),
                "bn": {"gamma": jnp.ones((cout,), jnp.float32),
                       "beta": jnp.zeros((cout,), jnp.float32),
                       "mean": jnp.zeros((cout,), jnp.float32),
                       "var": jnp.ones((cout,), jnp.float32)}}

    params = {}
    for branch, specs in ENC_SPECS.items():
        for li, (ci, co) in enumerate(specs):
            params[f"{branch}_conv{li + 1}"] = conv_p(ci, co)
    for di, (ci, co) in enumerate(DEC_SPECS):
        params[f"u{di + 6}"] = deconv_p(ci, co)
    return params


def _apply_decoder(x, p):
    bn = p["bn"]
    return decoder_deconv(x, p["w"], p["b"], bn["gamma"], bn["beta"],
                          bn["mean"], bn["var"])


def synthetic_s2_forward(params, S2b, S2a, S1):
    to_nhwc = lambda t: jnp.transpose(t, (0, 2, 3, 1))
    S2b, S2a, S1 = map(to_nhwc, (S2b, S2a, S1))

    def run_branch(x, prefix):
        feats = []
        for i in range(1, 7):
            p = params[f"{prefix}_conv{i}"]
            x = encoder_conv(x, p["w"], p["b"])
            feats.append(x)
        return feats

    b = run_branch(S2b, "s2b")
    a = run_branch(S2a, "s2a")
    s = run_branch(S1, "s1")
    cat = lambda i: jnp.concatenate([b[i], a[i], s[i]], axis=-1)

    u = _apply_decoder(cat(5), params["u6"])                 # U6 (no skip)
    for name, lvl in (("u7", 4), ("u8", 3), ("u9", 2), ("u10", 1), ("u11", 0)):
        u = _apply_decoder(jnp.concatenate([u, cat(lvl)], axis=-1),
                           params[name])
    return jnp.transpose(u.astype(jnp.float32), (0, 3, 1, 2))  # back to NCHW


# ----------------------------------------------------------------------------
if __name__ == "__main__":
    params = init_params(0)

    # 64x64 is the spatial size the (k=4, s=2, p=33) geometry fixes: every
    # encoder/decoder level stays 64x64 so all U-Net skip concatenations align.
    B, H, W = 1, 64, 64
    k0 = jax.random.PRNGKey(0)
    k1, k2, k3, k4, k5, k6, k7, k8, k9 = jax.random.split(k0, 9)
    S2b = jax.random.normal(k1, (B, 4, H, W), jnp.float32)
    S2a = jax.random.normal(k2, (B, 4, H, W), jnp.float32)
    S1 = jax.random.normal(k3, (B, 2, H, W), jnp.float32)

    # --- sanity check 1: fused matmul+shift+act kernel vs XLA reference ------
    xs = jax.random.normal(k4, (160, 200), jnp.float32).astype(jnp.bfloat16)
    ws = jax.random.normal(k5, (200, 72), jnp.float32).astype(jnp.bfloat16)
    bs = jnp.linspace(-1.0, 1.0, 72, dtype=jnp.float32)
    got = fused_matmul_act(xs, ws, bs, act="leaky_relu", slope=0.01)
    ref = xs.astype(jnp.float32) @ ws.astype(jnp.float32) + bs
    ref = jnp.where(ref >= 0, ref, 0.01 * ref)
    np.testing.assert_allclose(np.asarray(got, np.float32), np.asarray(ref),
                               rtol=2e-2, atol=2e-2)

    # --- sanity check 2: interior-only encoder conv vs lax.conv reference ----
    ci, co = 4, 8
    xe = jax.random.normal(k8, (1, H, W, ci), jnp.float32)
    we = jax.random.normal(k9, (co, ci, 4, 4), jnp.float32) * 0.1
    be = jnp.linspace(-0.2, 0.2, co, dtype=jnp.float32)
    got_e = encoder_conv(xe, we, be)
    ref_e = jax.lax.conv_general_dilated(
        xe, jnp.transpose(we, (2, 3, 1, 0)),
        window_strides=(2, 2), padding=[(33, 33), (33, 33)],
        dimension_numbers=("NHWC", "HWIO", "NHWC")) + be
    ref_e = jnp.where(ref_e >= 0, ref_e, 0.01 * ref_e)
    np.testing.assert_allclose(np.asarray(got_e, np.float32),
                               np.asarray(ref_e), rtol=5e-2, atol=5e-2)

    # --- sanity check 3: sub-pixel ConvTranspose2d path vs numpy reference ---
    ci, co = 8, 8
    xt = jax.random.normal(k6, (1, H, W, ci), jnp.float32)
    wt = jax.random.normal(k7, (ci, co, 4, 4), jnp.float32) * 0.1
    bt = jnp.linspace(-0.1, 0.1, co, dtype=jnp.float32)
    ones, zeros = jnp.ones((co,), jnp.float32), jnp.zeros((co,), jnp.float32)
    got_d = decoder_deconv(xt, wt, bt, ones, zeros, zeros, ones)
    xn, wn, bn_ = np.asarray(xt), np.asarray(wt), np.asarray(bt)
    full = np.zeros((1, 2 * H + 2, 2 * W + 2, co), np.float32)
    for ky in range(4):
        for kx in range(4):
            full[:, ky:ky + 2 * H:2, kx:kx + 2 * W:2, :] += np.einsum(
                "nhwi,io->nhwo", xn, wn[:, :, ky, kx])
    ref_d = full[:, 33:33 + 2 * H - 64, 33:33 + 2 * W - 64, :] + bn_
    ref_d = np.maximum(ref_d / np.sqrt(1.0 + 1e-5), 0.0)   # eval-BN + ReLU
    np.testing.assert_allclose(np.asarray(got_d, np.float32), ref_d,
                               rtol=5e-2, atol=5e-2)

    # --- full forward pass ----------------------------------------------------
    out = jax.block_until_ready(synthetic_s2_forward(params, S2b, S2a, S1))
    assert out.shape == (B, 4, H, W), out.shape
    assert out.dtype == jnp.float32
    assert np.all(np.isfinite(np.asarray(out)))
    print("KERNEL_OK")
</pallas_src>

<mosaic_0001>
module attributes {stable_mosaic.version = 11 : i64} {
  func.func @_matmul_shift_act_kernel(%arg0: i32, %arg1: i32, %arg2: i32, %arg3: memref<1x160x256xbf16, #tpu.memory_space<vmem>>, %arg4: memref<1x256x128xbf16, #tpu.memory_space<vmem>>, %arg5: memref<1x128xf32, #tpu.memory_space<vmem>>, %arg6: memref<1x160x128xbf16, #tpu.memory_space<vmem>>) attributes {dimension_semantics = [#tpu.dimension_semantics<parallel>, #tpu.dimension_semantics<parallel>, #tpu.dimension_semantics<parallel>], iteration_bounds = array<i64: 1, 1, 1>, scalar_prefetch = 0 : i64, scratch_operands = 0 : i64, tpu.core_type = #tpu.core_type<tc>, window_params = [{transform_indices = @transform_0, window_bounds = array<i64: 1, 160, 256>}, {transform_indices = @transform_1, window_bounds = array<i64: 1, 256, 128>}, {transform_indices = @transform_2, window_bounds = array<i64: 1, 128>}, {transform_indices = @transform_3, window_bounds = array<i64: 1, 160, 128>}]} {
    %c0 = arith.constant 0 : index
    %c0_0 = arith.constant 0 : index
    %c0_1 = arith.constant 0 : index
    %0 = vector.load %arg3[%c0, %c0_0, %c0_1] : memref<1x160x256xbf16, #tpu.memory_space<vmem>>, vector<1x160x256xbf16>
    %1 = vector.shape_cast %0 : vector<1x160x256xbf16> to vector<160x256xbf16>
    %c0_2 = arith.constant 0 : index
    %c0_3 = arith.constant 0 : index
    %c0_4 = arith.constant 0 : index
    %2 = vector.load %arg4[%c0_2, %c0_3, %c0_4] : memref<1x256x128xbf16, #tpu.memory_space<vmem>>, vector<1x256x128xbf16>
    %3 = vector.shape_cast %2 : vector<1x256x128xbf16> to vector<256x128xbf16>
    %cst = arith.constant dense<0.000000e+00> : vector<160x128xf32>
    %4 = tpu.matmul %1, %3, %cst {dimension_numbers = #tpu.dot_dimension_numbers<[1], [0], [0], [1], [0, 0, 1, 1], [], []>} : vector<160x256xbf16>, vector<256x128xbf16>, vector<160x128xf32> -> vector<160x128xf32>
    %c0_5 = arith.constant 0 : index
    %c0_6 = arith.constant 0 : index
    %5 = vector.load %arg5[%c0_5, %c0_6] : memref<1x128xf32, #tpu.memory_space<vmem>>, vector<1x128xf32>
    %6 = vector.broadcast %5 : vector<1x128xf32> to vector<160x128xf32>
    %7 = arith.addf %4, %6 : vector<160x128xf32>
    %cst_7 = arith.constant 0.000000e+00 : f32
    %8 = vector.broadcast %cst_7 : f32 to vector<160x128xf32>
    %9 = arith.cmpf oge, %7, %8 : vector<160x128xf32>
    %cst_8 = arith.constant 0.00999999977 : f32
    %10 = vector.broadcast %cst_8 : f32 to vector<160x128xf32>
    %11 = arith.mulf %7, %10 : vector<160x128xf32>
    %12 = arith.select %9, %7, %11 : vector<160x128xi1>, vector<160x128xf32>
    %13 = arith.truncf %12 : vector<160x128xf32> to vector<160x128xbf16>
    %c0_9 = arith.constant 0 : index
    %c0_10 = arith.constant 0 : index
    %c0_11 = arith.constant 0 : index
    %14 = vector.load %arg6[%c0_9, %c0_10, %c0_11] : memref<1x160x128xbf16, #tpu.memory_space<vmem>>, vector<1x160x128xbf16>
    %15 = vector.shape_cast %14 : vector<1x160x128xbf16> to vector<160x128xbf16>
    %16 = vector.shape_cast %13 : vector<160x128xbf16> to vector<1x160x128xbf16>
    tpu.vector_store %arg6[%c0_9, %c0_10, %c0_11], %16 {strides = array<i32>} : memref<1x160x128xbf16, #tpu.memory_space<vmem>>, vector<1x160x128xbf16>,
    return
  }
  func.func @transform_0(%arg0: i32, %arg1: i32, %arg2: i32) -> (i32, i32, i32) {
    %c0_i32 = arith.constant 0 : i32
    %c0_i32_0 = arith.constant 0 : i32
    return %arg0, %arg2, %c0_i32 : i32, i32, i32
  }
  func.func @transform_1(%arg0: i32, %arg1: i32, %arg2: i32) -> (i32, i32, i32) {
    %c0_i32 = arith.constant 0 : i32
    %c0_i32_0 = arith.constant 0 : i32
    return %arg0, %c0_i32, %arg1 : i32, i32, i32
  }
  func.func @transform_2(%arg0: i32, %arg1: i32, %arg2: i32) -> (i32, i32) {
    %c0_i32 = arith.constant 0 : i32
    %c0_i32_0 = arith.constant 0 : i32
    return %c0_i32, %arg1 : i32, i32
  }
  func.func @transform_3(%arg0: i32, %arg1: i32, %arg2: i32) -> (i32, i32, i32) {
    %c0_i32 = arith.constant 0 : i32
    return %arg0, %arg2, %arg1 : i32, i32, i32
  }
}

</mosaic_0001>

<bundles_post_ra>
// kernel: tpu_custom_call.1
= control target key start
LH: loop header
LB: loop body
LE: loop exit
PB: predicated region body
PF: predicated region fallthrough
CT: control target
= control target key end

     0   :  { %8 = vsyncpa [#allocation3], 0  ;;  %s1037_s0 = inlined_call_operand.hbm [shape: bf16[1,160,256], index: 0, kind: input, shape index: {}]   ;;  %s1038_s1 = inlined_call_operand.hbm [shape: bf16[1,256,128], index: 1, kind: input, shape index: {}]   ;;  %s1039_s2 = inlined_call_operand.vmem [shape: f32[1,128], index: 2, kind: input, shape index: {}]   ;;  %s1040_s3 = inlined_call_operand.hbm [shape: bf16[1,160,128], index: 3, kind: output, shape index: {}]  }
   0x1   :  { %9 = vsyncpa [#allocation6], 0 }
   0x2   :  { %10 = vsyncpa [#allocation4], 0  ;;  %s943_s12 = smov [#allocation2]   ;;  %s871_s16 = scalar_lea.hbm %s1037_s0, 2560 }
   0x3   :  { %s16_s13 = sshll.u32 %s943_s12, 4  ;;  %p872_p0 = scmp.ne.s32.totalorder %s1037_s0, %s871_s16  ;;  %s17_s13 = int_to_ptr.vmem [resolvable:$true] %s16_s13 }
   0x4   :  { %p875_p1 = scmp.lt.u32.totalorder %s871_s16, %s1037_s0 }
   0x6   :  { %p877_p2 = pnand %p875_p1, %p872_p0 }
   0x8   :  { %880 = shalt.err (!%p877_p2)
}
   0x9   :  { %s881_s21 = scalar_lea.vmem %s17_s13, 2560  ;;  %p886_p4 = scmp.lt.s32.totalorder %s17_s13, %s17_s13 }
   0xa   :  { %p882_p3 = scmp.ne.s32.totalorder %s17_s13, %s881_s21  ;;  %p887_p5 = scmp.lt.s32.totalorder %s881_s21, %s881_s21 }
   0xc   :  { %p888_p6 = por %p887_p5, %p886_p4 }
   0xe   :  { %p889_p7 = pnand %p888_p6, %p882_p3 }
  0x10   :  { %892 = shalt.err (!%p889_p7)
}
  0x11   :  { %s944_s22 = smov 128   ;;  %s945_s23 = smov 8  }
  0x12   :  { %22 = dma.hbm_to_vmem [thread:$0]  %s1037_s0, 2560, %s17_s13, [#allocation3], %s944_s22, %s944_s22, %s945_s23  }
  0x13   :  { %s946_s26 = smov [#allocation5]   ;;  %s893_s30 = scalar_lea.hbm %s1038_s1, 2048 }
  0x14   :  { %s28_s27 = sshll.u32 %s946_s26, 4  ;;  %p894_p8 = scmp.ne.s32.totalorder %s1038_s1, %s893_s30  ;;  %s29_s27 = int_to_ptr.vmem [resolvable:$true] %s28_s27 }
  0x15   :  { %p897_p9 = scmp.lt.u32.totalorder %s893_s30, %s1038_s1 }
  0x17   :  { %p899_p10 = pnand %p897_p9, %p894_p8 }
  0x19   :  { %902 = shalt.err (!%p899_p10)
}
  0x1a   :  { %s903_s8 = scalar_lea.vmem %s29_s27, 2048  ;;  %p908_p12 = scmp.lt.s32.totalorder %s29_s27, %s29_s27 }
  0x1b   :  { %p904_p11 = scmp.ne.s32.totalorder %s29_s27, %s903_s8  ;;  %p909_p13 = scmp.lt.s32.totalorder %s903_s8, %s903_s8 }
  0x1d   :  { %p910_p0 = por %p909_p13, %p908_p12 }
  0x1f   :  { %p911_p1 = pnand %p910_p0, %p904_p11 }
  0x21   :  { %914 = shalt.err (!%p911_p1)
}
  0x22   :  { %s947_s0 = smov 64   ;;  %s948_s9 = smov 4  }
  0x23   :  { %34 = dma.hbm_to_vmem [thread:$0]  %s1038_s1, 2048, %s29_s27, [#allocation6], %s947_s0, %s947_s0, %s948_s9  }
  0x24   :  { %937 = dma.done.wait [#allocation3], 2560  }
  0x25   :  { %938 = vsyncadd [#allocation3], 4294964736 }
  0x26   :  { %939 = dma.done.wait [#allocation6], 2048  }
  0x27   :  { %940 = vsyncadd [#allocation6], 4294965248  ;;  %v825_v0 = vld [vmem:[#allocation5 + $0x40] sm:$0xff]   ;;  %v827_v2 = vld [vmem:[#allocation5 + $0x48] sm:$0xff]  }
  0x28   :  { %v826_v1 = vld [vmem:[#allocation5] sm:$0xff]   ;;  %726 = vmatprep.subr.bf16.mxu0 %v825_v0  ;;  %802 = vmatprep.subr.bf16.mxu1 %v825_v0  ;;  %v828_v3 = vld [vmem:[#allocation5 + $0x8] sm:$0xff]   ;;  %v829_v4 = vld [vmem:[#allocation5 + $0x50] sm:$0xff]  }
  0x29   :  { %727 = vmatpush3.bf16.msra.mxu0 %v826_v1  ;;  %810 = vmatpush3.bf16.msra.mxu1 %v826_v1  ;;  %v830_v5 = vld [vmem:[#allocation5 + $0x10] sm:$0xff]   ;;  %v831_v6 = vld [vmem:[#allocation5 + $0x58] sm:$0xff]   ;;  %v833_v8 = vld [vmem:[#allocation5 + $0x60] sm:$0xff]  }
  0x2a   :  { %728 = vmatprep.subr.bf16.mxu0 %v827_v2  ;;  %803 = vmatprep.subr.bf16.mxu1 %v827_v2  ;;  %v832_v7 = vld [vmem:[#allocation5 + $0x18] sm:$0xff]   ;;  %v834_v9 = vld [vmem:[#allocation5 + $0x20] sm:$0xff]   ;;  %v835_v10 = vld [vmem:[#allocation5 + $0x68] sm:$0xff]  }
  0x2b   :  { %v843_v11 = vld [vmem:[#allocation2 + $0x4] ss:$8 sps:$4 sm:$0xff]   ;;  %v846_v12 = vld [vmem:[#allocation2 + $0x54] ss:$8 sps:$4 sm:$0xff]   ;;  %v841_v18 = vld [vmem:[#allocation2] ss:$8 sps:$4 sm:$0xff]  }
  0x2c   :  { %v836_v13 = vld [vmem:[#allocation5 + $0x28] sm:$0xff]   ;;  %v837_v14 = vld [vmem:[#allocation5 + $0x70] sm:$0xff]   ;;  %331 = vmatprep.mubr.bf16.mxu0 %v843_v11  ;;  %371 = vmatprep.mubr.bf16.mxu1 %v846_v12  ;;  %v839_v16 = vld [vmem:[#allocation5 + $0x78] sm:$0xff]  }
  0x2d   :  { %729 = vmatpush3.bf16.msra.mxu0 %v828_v3  ;;  %811 = vmatpush3.bf16.msra.mxu1 %v828_v3  ;;  %v838_v15 = vld [vmem:[#allocation5 + $0x30] sm:$0xff]   ;;  %v840_v17 = vld [vmem:[#allocation5 + $0x38] sm:$0xff]   ;;  %v849_v21 = vld [vmem:[#allocation2 + $0x64] ss:$8 sps:$4 sm:$0xff]  }
  0x2e   :  { %730 = vmatprep.subr.bf16.mxu0 %v829_v4  ;;  %804 = vmatprep.subr.bf16.mxu1 %v829_v4  ;;  %v844_v19 = vld [vmem:[#allocation2 + $0x50] ss:$8 sps:$4 sm:$0xff]   ;;  %v847_v20 = vld [vmem:[#allocation2 + $0x14] ss:$8 sps:$4 sm:$0xff]   ;;  %v852_v23 = vld [vmem:[#allocation2 + $0x60] ss:$8 sps:$4 sm:$0xff]  }
  0x2f   :  { %v851_v22 = vld [vmem:[#allocation2 + $0x10] ss:$8 sps:$4 sm:$0xff]   ;;  %v853_v24 = vld [vmem:[#allocation2 + $0x24] ss:$8 sps:$4 sm:$0xff]   ;;  %v855_v25 = vld [vmem:[#allocation2 + $0x74] ss:$8 sps:$4 sm:$0xff]  }
  0x30   :  { %v857_v26 = vld [vmem:[#allocation2 + $0x20] ss:$8 sps:$4 sm:$0xff]   ;;  %v858_v27 = vld [vmem:[#allocation2 + $0x70] ss:$8 sps:$4 sm:$0xff]   ;;  %v859_v28 = vld [vmem:[#allocation2 + $0x34] ss:$8 sps:$4 sm:$0xff]  }
  0x31   :  { %731 = vmatpush3.bf16.msra.mxu0 %v830_v5  ;;  %812 = vmatpush3.bf16.msra.mxu1 %v830_v5  ;;  %v861_v29 = vld [vmem:[#allocation2 + $0x84] ss:$8 sps:$4 sm:$0xff]   ;;  %v863_v30 = vld [vmem:[#allocation2 + $0x30] ss:$8 sps:$4 sm:$0xff]   ;;  %v864_v31 = vld [vmem:[#allocation2 + $0x80] ss:$8 sps:$4 sm:$0xff]  }
  0x32   :  { %732 = vmatprep.subr.bf16.mxu0 %v831_v6  ;;  %805 = vmatprep.subr.bf16.mxu1 %v831_v6  ;;  %v865_v32 = vld [vmem:[#allocation2 + $0x44] ss:$8 sps:$4 sm:$0xff]   ;;  %v867_v33 = vld [vmem:[#allocation2 + $0x94] ss:$8 sps:$4 sm:$0xff]   ;;  %v869_v34 = vld [vmem:[#allocation2 + $0x40] ss:$8 sps:$4 sm:$0xff]  }
  0x33   :  { %v870_v35 = vld [vmem:[#allocation2 + $0x90] ss:$8 sps:$4 sm:$0xff]   ;;  %v1000_v38 = vld [vmem:[%s1039_s2] ss:$0 sm:$0xff]  ;;  %s949_s2 = smov [#allocation7]  }
  0x34   :  { %s577_s13 = sshll.u32 %s949_s2, 4  ;;  %s578_s13 = int_to_ptr.vmem [resolvable:$true] %s577_s13 }
  0x35   :  { %733 = vmatpush3.bf16.msra.mxu0 %v832_v7  ;;  %813 = vmatpush3.bf16.msra.mxu1 %v832_v7  ;;  %s915_s14 = scalar_lea.vmem %s578_s13, 1280  ;;  %p920_p3 = scmp.lt.s32.totalorder %s578_s13, %s578_s13 }
  0x36   :  { %734 = vmatprep.subr.bf16.mxu0 %v833_v8  ;;  %806 = vmatprep.subr.bf16.mxu1 %v833_v8  ;;  %p916_p2 = scmp.ne.s32.totalorder %s578_s13, %s915_s14  ;;  %p921_p4 = scmp.lt.s32.totalorder %s915_s14, %s915_s14 }
  0x38   :  { %p922_p5 = por %p921_p4, %p920_p3 }
  0x39   :  { %735 = vmatpush3.bf16.msra.mxu0 %v834_v9  ;;  %814 = vmatpush3.bf16.msra.mxu1 %v834_v9 }
  0x3a   :  { %736 = vmatprep.subr.bf16.mxu0 %v835_v10  ;;  %807 = vmatprep.subr.bf16.mxu1 %v835_v10  ;;  %p923_p6 = pnand %p922_p5, %p916_p2 }
  0x3d   :  { %737 = vmatpush3.bf16.msra.mxu0 %v836_v13  ;;  %815 = vmatpush3.bf16.msra.mxu1 %v836_v13 }
  0x3e   :  { %738 = vmatprep.subr.bf16.mxu0 %v837_v14  ;;  %808 = vmatprep.subr.bf16.mxu1 %v837_v14 }
  0x41   :  { %739 = vmatpush3.bf16.msra.mxu0 %v838_v15  ;;  %816 = vmatpush3.bf16.msra.mxu1 %v838_v15 }
  0x42   :  { %740 = vmatprep.subr.bf16.mxu0 %v839_v16  ;;  %809 = vmatprep.subr.bf16.mxu1 %v839_v16 }
  0x45   :  { %741 = vmatpush3.bf16.msra.mxu0 %v840_v17  ;;  %817 = vmatpush3.bf16.msra.mxu1 %v840_v17 }
  0x48   :  { %332 = vmatmul.mubr.bf16.vlgmr.msra.gmra.mrb[0].mxu0 %v841_v18  ;;  %372 = vmatmul.mubr.bf16.vlgmr.msra.gmra.mrb[0].mxu1 %v844_v19 }
  0x49   :  { %339 = vmatprep.mubr.bf16.mxu0 %v847_v20  ;;  %379 = vmatprep.mubr.bf16.mxu1 %v849_v21 }
  0x50   :  { %340 = vmatmul.mubr.bf16.gmra.mrb[4].mxu0 %v851_v22  ;;  %380 = vmatmul.mubr.bf16.gmra.mrb[4].mxu1 %v852_v23 }
  0x51   :  { %347 = vmatprep.mubr.bf16.mxu0 %v853_v24  ;;  %387 = vmatprep.mubr.bf16.mxu1 %v855_v25 }
  0x58   :  { %348 = vmatmul.mubr.bf16.gmra.mrb[8].mxu0 %v857_v26  ;;  %388 = vmatmul.mubr.bf16.gmra.mrb[8].mxu1 %v858_v27 }
  0x59   :  { %355 = vmatprep.mubr.bf16.mxu0 %v859_v28  ;;  %395 = vmatprep.mubr.bf16.mxu1 %v861_v29 }
  0x60   :  { %356 = vmatmul.mubr.bf16.gmra.mrb[12].mxu0 %v863_v30  ;;  %396 = vmatmul.mubr.bf16.gmra.mrb[12].mxu1 %v864_v31 }
  0x61   :  { %363 = vmatprep.mubr.bf16.mxu0 %v865_v32  ;;  %403 = vmatprep.mubr.bf16.mxu1 %v867_v33 }
  0x68   :  { %364 = vmatmul.mubr.bf16.gmra.mrb[16].mxu0 %v869_v34  ;;  %404 = vmatmul.mubr.bf16.gmra.mrb[16].mxu1 %v870_v35 }
 0x11b   :  { %v742_v36 = vpop.f32.mrb[0].mxu0  ;;  %v772_v37 = vpop.f32.mrb[0].mxu1 }
 0x11c   :  { %v743_v39 = vpop.f32.mrb[1].mxu0  ;;  %v773_v40 = vpop.f32.mrb[1].mxu1 }
 0x11d   :  { %v744_v41 = vadd.f32 %v743_v39, %v742_v36  ;;  %v774_v42 = vadd.f32 %v773_v40, %v772_v37  ;;  %v745_v43 = vpop.f32.mrb[2].mxu0  ;;  %v775_v44 = vpop.f32.mrb[2].mxu1 }
 0x11e   :  { %v746_v45 = vpop.f32.mrb[3].mxu0  ;;  %v776_v46 = vpop.f32.mrb[3].mxu1 }
 0x11f   :  { %v334_v47 = vadd.f32 %v744_v41, %v1000_v38  ;;  %v374_v48 = vadd.f32 %v774_v42, %v1000_v38  ;;  %v747_v49 = vadd.f32 %v746_v45, %v745_v43  ;;  %v777_v50 = vadd.f32 %v776_v46, %v775_v44 }
 0x121   :  { %v432_v51 = vmul.f32 0.01, %v334_v47  ;;  %v442_v52 = vmul.f32 0.01, %v374_v48  ;;  %vm412_vm0 = vcmp.ge.f32.partialorder %v334_v47, 0.0  ;;  %vm422_vm1 = vcmp.ge.f32.partialorder %v374_v48, 0.0 }
 0x122   :  { %v337_v53 = vadd.f32 %v747_v49, %v1000_v38  ;;  %v377_v54 = vadd.f32 %v777_v50, %v1000_v38 }
 0x123   :  { %v748_v55 = vpop.f32.mrb[4].mxu0  ;;  %v778_v56 = vpop.f32.mrb[4].mxu1  ;;  %v452_v59 = vsel %vm412_vm0, %v334_v47, %v432_v51  ;;  %v462_v60 = vsel %vm422_vm1, %v374_v48, %v442_v52 }
 0x124   :  { %vm413_vm2 = vcmp.ge.f32.partialorder %v337_v53, 0.0  ;;  %v433_v57 = vmul.f32 0.01, %v337_v53  ;;  %vm423_vm3 = vcmp.ge.f32.partialorder %v377_v54, 0.0  ;;  %v443_v58 = vmul.f32 0.01, %v377_v54 }
 0x125   :  { %v749_v61 = vpop.f32.mrb[5].mxu0  ;;  %v779_v62 = vpop.f32.mrb[5].mxu1 }
 0x126   :  { %v453_v63 = vsel %vm413_vm2, %v337_v53, %v433_v57  ;;  %v463_v0 = vsel %vm423_vm3, %v377_v54, %v443_v58  ;;  %v750_v1 = vadd.f32 %v749_v61, %v748_v55  ;;  %v780_v2 = vadd.f32 %v779_v62, %v778_v56  ;;  %v751_v3 = vpop.f32.mrb[6].mxu0  ;;  %v781_v4 = vpop.f32.mrb[6].mxu1 }
 0x127   :  { %v670_v5 = vpack.c.bf16 %v453_v63, %v452_v59  ;;  %v695_v6 = vpack.c.bf16 %v463_v0, %v462_v60  ;;  %v752_v7 = vpop.f32.mrb[7].mxu0  ;;  %v782_v8 = vpop.f32.mrb[7].mxu1 }
 0x128   :  { %v342_v9 = vadd.f32 %v750_v1, %v1000_v38  ;;  %v382_v10 = vadd.f32 %v780_v2, %v1000_v38  ;;  %v753_v11 = vadd.f32 %v752_v7, %v751_v3  ;;  %v783_v12 = vadd.f32 %v782_v8, %v781_v4 }
 0x129   :  { %671 = vst [vmem:[#allocation7] sm:$0xff] %v670_v5   ;;  %721 = vst [vmem:[#allocation7 + $0x28] sm:$0xff] %v695_v6  }
 0x12a   :  { %v434_v13 = vmul.f32 0.01, %v342_v9  ;;  %v444_v14 = vmul.f32 0.01, %v382_v10  ;;  %v345_v15 = vadd.f32 %v753_v11, %v1000_v38  ;;  %v385_v16 = vadd.f32 %v783_v12, %v1000_v38 }
 0x12b   :  { %v754_v17 = vpop.f32.mrb[8].mxu0  ;;  %v784_v18 = vpop.f32.mrb[8].mxu1  ;;  %vm414_vm4 = vcmp.ge.f32.partialorder %v342_v9, 0.0  ;;  %vm424_vm5 = vcmp.ge.f32.partialorder %v382_v10, 0.0 }
 0x12c   :  { %v755_v19 = vpop.f32.mrb[9].mxu0  ;;  %v785_v20 = vpop.f32.mrb[9].mxu1  ;;  %vm415_vm6 = vcmp.ge.f32.partialorder %v345_v15, 0.0  ;;  %v435_v21 = vmul.f32 0.01, %v345_v15  ;;  %vm425_vm7 = vcmp.ge.f32.partialorder %v385_v16, 0.0  ;;  %v454_v27 = vsel %vm414_vm4, %v342_v9, %v434_v13 }
 0x12d   :  { %v445_v22 = vmul.f32 0.01, %v385_v16  ;;  %v756_v23 = vadd.f32 %v755_v19, %v754_v17  ;;  %v786_v24 = vadd.f32 %v785_v20, %v784_v18  ;;  %v757_v25 = vpop.f32.mrb[10].mxu0  ;;  %v787_v26 = vpop.f32.mrb[10].mxu1  ;;  %v464_v28 = vsel %vm424_vm5, %v382_v10, %v444_v14 }
 0x12e   :  { %v455_v29 = vsel %vm415_vm6, %v345_v15, %v435_v21  ;;  %v758_v31 = vpop.f32.mrb[11].mxu0  ;;  %v788_v32 = vpop.f32.mrb[11].mxu1 }
 0x12f   :  { %v465_v30 = vsel %vm425_vm7, %v385_v16, %v445_v22  ;;  %v675_v33 = vpack.c.bf16 %v455_v29, %v454_v27  ;;  %v350_v35 = vadd.f32 %v756_v23, %v1000_v38  ;;  %v390_v36 = vadd.f32 %v786_v24, %v1000_v38 }
 0x130   :  { %v700_v34 = vpack.c.bf16 %v465_v30, %v464_v28  ;;  %v759_v37 = vadd.f32 %v758_v31, %v757_v25  ;;  %v789_v39 = vadd.f32 %v788_v32, %v787_v26 }
 0x131   :  { %717 = vst [vmem:[#allocation7 + $0x8] sm:$0xff] %v675_v33   ;;  %v436_v40 = vmul.f32 0.01, %v350_v35  ;;  %v446_v41 = vmul.f32 0.01, %v390_v36  ;;  %vm416_vm8 = vcmp.ge.f32.partialorder %v350_v35, 0.0 }
 0x132   :  { %722 = vst [vmem:[#allocation7 + $0x30] sm:$0xff] %v700_v34   ;;  %v353_v42 = vadd.f32 %v759_v37, %v1000_v38  ;;  %v393_v43 = vadd.f32 %v789_v39, %v1000_v38  ;;  %vm426_vm9 = vcmp.ge.f32.partialorder %v390_v36, 0.0 }
 0x133   :  { %v760_v44 = vpop.f32.mrb[12].mxu0  ;;  %v790_v45 = vpop.f32.mrb[12].mxu1  ;;  %v456_v54 = vsel %vm416_vm8, %v350_v35, %v436_v40  ;;  %v466_v55 = vsel %vm426_vm9, %v390_v36, %v446_v41 }
 0x134   :  { %v761_v46 = vpop.f32.mrb[13].mxu0  ;;  %v791_v47 = vpop.f32.mrb[13].mxu1  ;;  %vm417_vm10 = vcmp.ge.f32.partialorder %v353_v42, 0.0  ;;  %v437_v48 = vmul.f32 0.01, %v353_v42  ;;  %vm427_vm11 = vcmp.ge.f32.partialorder %v393_v43, 0.0 }
 0x135   :  { %v447_v49 = vmul.f32 0.01, %v393_v43  ;;  %v762_v50 = vadd.f32 %v761_v46, %v760_v44  ;;  %v792_v51 = vadd.f32 %v791_v47, %v790_v45  ;;  %v763_v52 = vpop.f32.mrb[14].mxu0  ;;  %v793_v53 = vpop.f32.mrb[14].mxu1 }
 0x136   :  { %v457_v56 = vsel %vm417_vm10, %v353_v42, %v437_v48  ;;  %v764_v58 = vpop.f32.mrb[15].mxu0  ;;  %v794_v59 = vpop.f32.mrb[15].mxu1 }
 0x137   :  { %v467_v57 = vsel %vm427_vm11, %v393_v43, %v447_v49  ;;  %v680_v60 = vpack.c.bf16 %v457_v56, %v456_v54  ;;  %v358_v62 = vadd.f32 %v762_v50, %v1000_v38  ;;  %v398_v63 = vadd.f32 %v792_v51, %v1000_v38 }
 0x138   :  { %v705_v61 = vpack.c.bf16 %v467_v57, %v466_v55  ;;  %v765_v0 = vadd.f32 %v764_v58, %v763_v52  ;;  %v795_v1 = vadd.f32 %v794_v59, %v793_v53 }
 0x139   :  { %718 = vst [vmem:[#allocation7 + $0x10] sm:$0xff] %v680_v60   ;;  %v438_v2 = vmul.f32 0.01, %v358_v62  ;;  %v448_v3 = vmul.f32 0.01, %v398_v63  ;;  %vm418_vm12 = vcmp.ge.f32.partialorder %v358_v62, 0.0 }
 0x13a   :  { %723 = vst [vmem:[#allocation7 + $0x38] sm:$0xff] %v705_v61   ;;  %v361_v4 = vadd.f32 %v765_v0, %v1000_v38  ;;  %v401_v5 = vadd.f32 %v795_v1, %v1000_v38  ;;  %vm428_vm13 = vcmp.ge.f32.partialorder %v398_v63, 0.0 }
 0x13b   :  { %v766_v6 = vpop.f32.mrb[16].mxu0  ;;  %v796_v7 = vpop.f32.mrb[16].mxu1  ;;  %v458_v16 = vsel %vm418_vm12, %v358_v62, %v438_v2  ;;  %v468_v17 = vsel %vm428_vm13, %v398_v63, %v448_v3 }
 0x13c   :  { %v767_v8 = vpop.f32.mrb[17].mxu0  ;;  %v797_v9 = vpop.f32.mrb[17].mxu1  ;;  %vm419_vm14 = vcmp.ge.f32.partialorder %v361_v4, 0.0  ;;  %v439_v10 = vmul.f32 0.01, %v361_v4  ;;  %vm429_vm15 = vcmp.ge.f32.partialorder %v401_v5, 0.0 }
 0x13d   :  { %v449_v11 = vmul.f32 0.01, %v401_v5  ;;  %v768_v12 = vadd.f32 %v767_v8, %v766_v6  ;;  %v798_v13 = vadd.f32 %v797_v9, %v796_v7  ;;  %v769_v14 = vpop.f32.mrb[18].mxu0  ;;  %v799_v15 = vpop.f32.mrb[18].mxu1 }
 0x13e   :  { %v459_v18 = vsel %vm419_vm14, %v361_v4, %v439_v10  ;;  %v770_v20 = vpop.f32.mrb[19].mxu0  ;;  %v800_v21 = vpop.f32.mrb[19].mxu1 }
 0x13f   :  { %v469_v19 = vsel %vm429_vm15, %v401_v5, %v449_v11  ;;  %v685_v22 = vpack.c.bf16 %v459_v18, %v458_v16  ;;  %v366_v24 = vadd.f32 %v768_v12, %v1000_v38  ;;  %v406_v25 = vadd.f32 %v798_v13, %v1000_v38 }
 0x140   :  { %v710_v23 = vpack.c.bf16 %v469_v19, %v468_v17  ;;  %v771_v26 = vadd.f32 %v770_v20, %v769_v14  ;;  %v801_v27 = vadd.f32 %v800_v21, %v799_v15 }
 0x141   :  { %719 = vst [vmem:[#allocation7 + $0x18] sm:$0xff] %v685_v22   ;;  %v440_v28 = vmul.f32 0.01, %v366_v24  ;;  %v450_v29 = vmul.f32 0.01, %v406_v25  ;;  %vm420_vm0 = vcmp.ge.f32.partialorder %v366_v24, 0.0 }
 0x142   :  { %724 = vst [vmem:[#allocation7 + $0x40] sm:$0xff] %v710_v23   ;;  %v369_v30 = vadd.f32 %v771_v26, %v1000_v38  ;;  %v409_v31 = vadd.f32 %v801_v27, %v1000_v38  ;;  %vm430_vm1 = vcmp.ge.f32.partialorder %v406_v25, 0.0 }
 0x143   :  { %v460_v34 = vsel %vm420_vm0, %v366_v24, %v440_v28  ;;  %v470_v35 = vsel %vm430_vm1, %v406_v25, %v450_v29 }
 0x144   :  { %vm421_vm2 = vcmp.ge.f32.partialorder %v369_v30, 0.0  ;;  %v441_v32 = vmul.f32 0.01, %v369_v30  ;;  %vm431_vm3 = vcmp.ge.f32.partialorder %v409_v31, 0.0  ;;  %v451_v33 = vmul.f32 0.01, %v409_v31 }
 0x146   :  { %v461_v36 = vsel %vm421_vm2, %v369_v30, %v441_v32  ;;  %v471_v37 = vsel %vm431_vm3, %v409_v31, %v451_v33 }
 0x147   :  { %v690_v39 = vpack.c.bf16 %v461_v36, %v460_v34  ;;  %v715_v40 = vpack.c.bf16 %v471_v37, %v470_v35 }
 0x149   :  { %720 = vst [vmem:[#allocation7 + $0x20] sm:$0xff] %v690_v39   ;;  %725 = vst [vmem:[#allocation7 + $0x48] sm:$0xff] %v715_v40  }
 0x14a   :  { %926 = shalt.err (!%p923_p6)
}
 0x14b   :  { %s927_s17 = scalar_lea.hbm %s1040_s3, 1280 }
 0x14c   :  { %p928_p7 = scmp.ne.s32.totalorder %s1040_s3, %s927_s17  ;;  %p931_p8 = scmp.lt.u32.totalorder %s927_s17, %s1040_s3 }
 0x14e   :  { %p933_p9 = pnand %p931_p8, %p928_p7 }
 0x150   :  { %936 = shalt.err (!%p933_p9)
}
 0x151   :  { %583 = dma.vmem_to_hbm [thread:$0]  %s578_s13, 1280, %s1040_s3, [#allocation4], %s947_s0, %s947_s0, %s948_s9  }
 0x152   :  { %941 = dma.done.wait [#allocation4], 1280  }
 0x153   :  { %942 = vsyncadd [#allocation4], 4294966016 }
 0x154   :  { %587 = vsyncpa [#allocation3], 1 }
 0x155   :  { %588 = vsyncpa [#allocation6], 1 }
 0x156   :  { %589 = vsyncpa [#allocation4], 1 }

</bundles_post_ra>
